<compile_context>
chip_gen: v5e
topology: v5e:2x2
jax: 0.10.0
libtpu: 0.0.40
codegen_flags: <defaults>
</compile_context>

<pallas_src>
import jax
import jax.numpy as jnp
from jax.experimental import pallas as pl
from jax.experimental.pallas import tpu as pltpu


def policy_net_kernel(x_ref,
                      w1_ref, b1_ref,
                      w2_ref, b2_ref,
                      w3_ref, b3_ref,
                      w4_ref, b4_ref,
                      out_ref):
    """One batch-tile of the MLP + softmax, entirely in VMEM.

    Weights are bf16 (MXU operands), biases f32.  The last layer is padded to
    128 output lanes: padded weight columns are 0 and padded biases are -1e30,
    so exp() underflows to exactly 0 and the 128-wide softmax equals the
    4-wide softmax on the real logits.
    """
    x = x_ref[...].astype(jnp.bfloat16)                       # (TB, 8)

    # Linear(8, 128) + ReLU    (bf16 MXU inputs, f32 accumulate)
    h = jnp.dot(x, w1_ref[...], preferred_element_type=jnp.float32) + b1_ref[...]
    h = jnp.maximum(h, 0.0)

    # Linear(128, 64) + ReLU
    h = jnp.dot(h.astype(jnp.bfloat16), w2_ref[...],
                preferred_element_type=jnp.float32) + b2_ref[...]
    h = jnp.maximum(h, 0.0)

    # Linear(64, 128) + ReLU
    h = jnp.dot(h.astype(jnp.bfloat16), w3_ref[...],
                preferred_element_type=jnp.float32) + b3_ref[...]
    h = jnp.maximum(h, 0.0)

    # Linear(128, 4) padded to 128 lanes
    logits = jnp.dot(h.astype(jnp.bfloat16), w4_ref[...],
                     preferred_element_type=jnp.float32) + b4_ref[...]  # (TB, 128)

    # softmax over last dim, numerically stabilized.  Padded lanes hold ~-1e30
    # so they never win the max and their exp underflows to 0.
    m = jnp.max(logits, axis=-1, keepdims=True)
    e = jnp.exp(logits - m)
    denom = jnp.sum(e, axis=-1, keepdims=True)
    out_ref[...] = (e * pl.reciprocal(denom, approx=True)).astype(out_ref.dtype)


def _round_up(n, m):
    return ((n + m - 1) // m) * m


def policy_net_forward(x, params, *, batch_tile=256):
    """x: (B, 8) float32.  Returns softmax probabilities (B, 4) float32."""
    B, in_dim = x.shape
    assert in_dim == 8

    (w1, b1), (w2, b2), (w3, b3), (w4, b4) = params

    # Pad the final layer to a lane-dense 128-wide output slab.
    n_out = w4.shape[1]           # 4
    n_pad = 128
    w4p = jnp.zeros((w4.shape[0], n_pad), w4.dtype).at[:, :n_out].set(w4)
    b4p = jnp.full((1, n_pad), -1e30, jnp.float32).at[:, :n_out].set(b4)

    # Batch tiling: one whole-batch tile for small B (single grid step),
    # otherwise 256-row tiles (fills the MXU M dimension; grid shards across
    # TensorCores on v7x via the "parallel" dimension semantics).
    tb = min(batch_tile, _round_up(B, 8))
    Bp = _round_up(B, tb)
    if Bp != B:
        x = jnp.pad(x, ((0, Bp - B), (0, 0)))

    grid = (Bp // tb,)

    # Weights/biases: full-array blocks, same block for every grid step
    # (constant index_map -> not re-fetched per step).
    def full_spec(shape):
        return pl.BlockSpec(shape, lambda i: (0,) * len(shape))

    out = pl.pallas_call(
        policy_net_kernel,
        out_shape=jax.ShapeDtypeStruct((Bp, n_pad), jnp.float32),
        grid_spec=pltpu.PrefetchScalarGridSpec(
            num_scalar_prefetch=0,
            grid=grid,
            in_specs=[
                pl.BlockSpec((tb, 8), lambda i: (i, 0)),        # x tile
                full_spec(w1.shape), full_spec(b1.shape),
                full_spec(w2.shape), full_spec(b2.shape),
                full_spec(w3.shape), full_spec(b3.shape),
                full_spec(w4p.shape), full_spec(b4p.shape),
            ],
            out_specs=pl.BlockSpec((tb, n_pad), lambda i: (i, 0)),
        ),
        compiler_params=pltpu.CompilerParams(
            dimension_semantics=("parallel",),
        ),
    )(x, w1, b1, w2, b2, w3, b3, w4p, b4p)

    return out[:B, :n_out]


def init_params(key):
    """nn.Linear-style U(-1/sqrt(fan_in), 1/sqrt(fan_in)) init.

    Weights stored pre-transposed as (in_features, out_features) in bfloat16
    (MXU operands); biases kept in float32 as (1, out_features).
    """
    dims = [(8, 128), (128, 64), (64, 128), (128, 4)]
    params = []
    for fan_in, fan_out in dims:
        key, kw, kb = jax.random.split(key, 3)
        bound = float(fan_in) ** -0.5
        w = jax.random.uniform(kw, (fan_in, fan_out), jnp.float32,
                               -bound, bound).astype(jnp.bfloat16)
        b = jax.random.uniform(kb, (1, fan_out), jnp.float32, -bound, bound)
        params.append((w, b))
    return params


def reference_forward(x, params):
    """Plain-JAX reference using the same bf16-operand / f32-accumulate math."""
    h = x
    for i, (w, b) in enumerate(params):
        h = jnp.dot(h.astype(jnp.bfloat16), w.astype(jnp.bfloat16),
                    preferred_element_type=jnp.float32) + b
        if i < len(params) - 1:
            h = jnp.maximum(h, 0.0)
    return jax.nn.softmax(h, axis=-1)


# TODO(synk): Policy_Net.save/load (torch.save/torch.load checkpoint I/O) are
# host-side utilities with no kernel equivalent; not implemented.

if __name__ == "__main__":
    key = jax.random.PRNGKey(0)
    key, kx1, kx2 = jax.random.split(key, 3)

    params = init_params(key)

    # Small batch (B=8, state dim 8): single whole-batch tile, no grid loop.
    B = 8
    x = jax.random.normal(kx1, (B, 8), jnp.float32)
    probs = jax.block_until_ready(policy_net_forward(x, params))
    ref = reference_forward(x, params)
    assert probs.shape == (B, 4)
    assert jnp.allclose(jnp.sum(probs, axis=-1), 1.0, atol=5e-3)
    assert jnp.allclose(probs, ref, atol=5e-3, rtol=5e-3)

    # Larger, non-tile-aligned batch: exercises padding + multi-tile grid path.
    B2 = 384
    x2 = jax.random.normal(kx2, (B2, 8), jnp.float32)
    probs2 = jax.block_until_ready(policy_net_forward(x2, params, batch_tile=256))
    ref2 = reference_forward(x2, params)
    assert probs2.shape == (B2, 4)
    assert jnp.allclose(jnp.sum(probs2, axis=-1), 1.0, atol=5e-3)
    assert jnp.allclose(probs2, ref2, atol=5e-3, rtol=5e-3)

    print("KERNEL_OK")
</pallas_src>

<mosaic_0001>
module attributes {stable_mosaic.version = 11 : i64} {
  func.func @policy_net_kernel(%arg0: i32, %arg1: memref<8x8xf32, #tpu.memory_space<vmem>>, %arg2: memref<8x128xbf16, #tpu.memory_space<vmem>>, %arg3: memref<1x128xf32, #tpu.memory_space<vmem>>, %arg4: memref<128x64xbf16, #tpu.memory_space<vmem>>, %arg5: memref<1x64xf32, #tpu.memory_space<vmem>>, %arg6: memref<64x128xbf16, #tpu.memory_space<vmem>>, %arg7: memref<1x128xf32, #tpu.memory_space<vmem>>, %arg8: memref<128x128xbf16, #tpu.memory_space<vmem>>, %arg9: memref<1x128xf32, #tpu.memory_space<vmem>>, %arg10: memref<8x128xf32, #tpu.memory_space<vmem>>) attributes {dimension_semantics = [#tpu.dimension_semantics<parallel>], iteration_bounds = array<i64: 1>, scalar_prefetch = 0 : i64, scratch_operands = 0 : i64, tpu.core_type = #tpu.core_type<tc>, window_params = [{transform_indices = @transform_0, window_bounds = array<i64: 8, 8>}, {pipeline_mode = #tpu.pipeline_mode<synchronous>, transform_indices = @transform_1, window_bounds = array<i64: 8, 128>}, {pipeline_mode = #tpu.pipeline_mode<synchronous>, transform_indices = @transform_2, window_bounds = array<i64: 1, 128>}, {pipeline_mode = #tpu.pipeline_mode<synchronous>, transform_indices = @transform_3, window_bounds = array<i64: 128, 64>}, {pipeline_mode = #tpu.pipeline_mode<synchronous>, transform_indices = @transform_4, window_bounds = array<i64: 1, 64>}, {pipeline_mode = #tpu.pipeline_mode<synchronous>, transform_indices = @transform_5, window_bounds = array<i64: 64, 128>}, {pipeline_mode = #tpu.pipeline_mode<synchronous>, transform_indices = @transform_6, window_bounds = array<i64: 1, 128>}, {pipeline_mode = #tpu.pipeline_mode<synchronous>, transform_indices = @transform_7, window_bounds = array<i64: 128, 128>}, {pipeline_mode = #tpu.pipeline_mode<synchronous>, transform_indices = @transform_8, window_bounds = array<i64: 1, 128>}, {transform_indices = @transform_9, window_bounds = array<i64: 8, 128>}]} {
    %c0 = arith.constant 0 : index
    %c0_0 = arith.constant 0 : index
    %0 = vector.load %arg1[%c0, %c0_0] : memref<8x8xf32, #tpu.memory_space<vmem>>, vector<8x8xf32>
    %1 = arith.truncf %0 : vector<8x8xf32> to vector<8x8xbf16>
    %c0_1 = arith.constant 0 : index
    %c0_2 = arith.constant 0 : index
    %2 = vector.load %arg2[%c0_1, %c0_2] : memref<8x128xbf16, #tpu.memory_space<vmem>>, vector<8x128xbf16>
    %cst = arith.constant dense<0.000000e+00> : vector<8x128xf32>
    %3 = tpu.matmul %1, %2, %cst {dimension_numbers = #tpu.dot_dimension_numbers<[1], [0], [0], [1], [0, 0, 1, 1], [], []>} : vector<8x8xbf16>, vector<8x128xbf16>, vector<8x128xf32> -> vector<8x128xf32>
    %c0_3 = arith.constant 0 : index
    %c0_4 = arith.constant 0 : index
    %4 = vector.load %arg3[%c0_3, %c0_4] : memref<1x128xf32, #tpu.memory_space<vmem>>, vector<1x128xf32>
    %5 = vector.broadcast %4 : vector<1x128xf32> to vector<8x128xf32>
    %6 = arith.addf %3, %5 : vector<8x128xf32>
    %cst_5 = arith.constant 0.000000e+00 : f32
    %7 = vector.broadcast %cst_5 : f32 to vector<8x128xf32>
    %8 = arith.maximumf %6, %7 : vector<8x128xf32>
    %9 = arith.truncf %8 : vector<8x128xf32> to vector<8x128xbf16>
    %c0_6 = arith.constant 0 : index
    %c0_7 = arith.constant 0 : index
    %10 = vector.load %arg4[%c0_6, %c0_7] : memref<128x64xbf16, #tpu.memory_space<vmem>>, vector<128x64xbf16>
    %cst_8 = arith.constant dense<0.000000e+00> : vector<8x64xf32>
    %11 = tpu.matmul %9, %10, %cst_8 {dimension_numbers = #tpu.dot_dimension_numbers<[1], [0], [0], [1], [0, 0, 1, 1], [], []>} : vector<8x128xbf16>, vector<128x64xbf16>, vector<8x64xf32> -> vector<8x64xf32>
    %c0_9 = arith.constant 0 : index
    %c0_10 = arith.constant 0 : index
    %12 = vector.load %arg5[%c0_9, %c0_10] : memref<1x64xf32, #tpu.memory_space<vmem>>, vector<1x64xf32>
    %13 = vector.broadcast %12 : vector<1x64xf32> to vector<8x64xf32>
    %14 = arith.addf %11, %13 : vector<8x64xf32>
    %cst_11 = arith.constant 0.000000e+00 : f32
    %15 = vector.broadcast %cst_11 : f32 to vector<8x64xf32>
    %16 = arith.maximumf %14, %15 : vector<8x64xf32>
    %17 = arith.truncf %16 : vector<8x64xf32> to vector<8x64xbf16>
    %c0_12 = arith.constant 0 : index
    %c0_13 = arith.constant 0 : index
    %18 = vector.load %arg6[%c0_12, %c0_13] : memref<64x128xbf16, #tpu.memory_space<vmem>>, vector<64x128xbf16>
    %cst_14 = arith.constant dense<0.000000e+00> : vector<8x128xf32>
    %19 = tpu.matmul %17, %18, %cst_14 {dimension_numbers = #tpu.dot_dimension_numbers<[1], [0], [0], [1], [0, 0, 1, 1], [], []>} : vector<8x64xbf16>, vector<64x128xbf16>, vector<8x128xf32> -> vector<8x128xf32>
    %c0_15 = arith.constant 0 : index
    %c0_16 = arith.constant 0 : index
    %20 = vector.load %arg7[%c0_15, %c0_16] : memref<1x128xf32, #tpu.memory_space<vmem>>, vector<1x128xf32>
    %21 = vector.broadcast %20 : vector<1x128xf32> to vector<8x128xf32>
    %22 = arith.addf %19, %21 : vector<8x128xf32>
    %cst_17 = arith.constant 0.000000e+00 : f32
    %23 = vector.broadcast %cst_17 : f32 to vector<8x128xf32>
    %24 = arith.maximumf %22, %23 : vector<8x128xf32>
    %25 = arith.truncf %24 : vector<8x128xf32> to vector<8x128xbf16>
    %c0_18 = arith.constant 0 : index
    %c0_19 = arith.constant 0 : index
    %26 = vector.load %arg8[%c0_18, %c0_19] : memref<128x128xbf16, #tpu.memory_space<vmem>>, vector<128x128xbf16>
    %cst_20 = arith.constant dense<0.000000e+00> : vector<8x128xf32>
    %27 = tpu.matmul %25, %26, %cst_20 {dimension_numbers = #tpu.dot_dimension_numbers<[1], [0], [0], [1], [0, 0, 1, 1], [], []>} : vector<8x128xbf16>, vector<128x128xbf16>, vector<8x128xf32> -> vector<8x128xf32>
    %c0_21 = arith.constant 0 : index
    %c0_22 = arith.constant 0 : index
    %28 = vector.load %arg9[%c0_21, %c0_22] : memref<1x128xf32, #tpu.memory_space<vmem>>, vector<1x128xf32>
    %29 = vector.broadcast %28 : vector<1x128xf32> to vector<8x128xf32>
    %30 = arith.addf %27, %29 : vector<8x128xf32>
    %cst_23 = arith.constant dense<0xFF800000> : vector<8xf32>
    %31 = vector.multi_reduction <maximumf>, %30, %cst_23 [1] : vector<8x128xf32> to vector<8xf32>
    %32 = vector.shape_cast %31 : vector<8xf32> to vector<8x1xf32>
    %33 = vector.broadcast %32 : vector<8x1xf32> to vector<8x128xf32>
    %34 = arith.subf %30, %33 : vector<8x128xf32>
    %35 = math.exp %34 : vector<8x128xf32>
    %cst_24 = arith.constant dense<0.000000e+00> : vector<8xf32>
    %36 = vector.multi_reduction <add>, %35, %cst_24 [1] : vector<8x128xf32> to vector<8xf32>
    %37 = vector.shape_cast %36 : vector<8xf32> to vector<8x1xf32>
    %38 = tpu.reciprocal %37 {approx = true} : vector<8x1xf32> -> vector<8x1xf32>
    %39 = vector.broadcast %38 : vector<8x1xf32> to vector<8x128xf32>
    %40 = arith.mulf %35, %39 : vector<8x128xf32>
    %c0_25 = arith.constant 0 : index
    %c0_26 = arith.constant 0 : index
    %41 = vector.load %arg10[%c0_25, %c0_26] : memref<8x128xf32, #tpu.memory_space<vmem>>, vector<8x128xf32>
    tpu.vector_store %arg10[%c0_25, %c0_26], %40 {strides = array<i32>} : memref<8x128xf32, #tpu.memory_space<vmem>>, vector<8x128xf32>,
    return
  }
  func.func @transform_0(%arg0: i32) -> (i32, i32) {
    %c0_i32 = arith.constant 0 : i32
    %c0_i32_0 = arith.constant 0 : i32
    return %arg0, %c0_i32 : i32, i32
  }
  func.func @transform_1(%arg0: i32) -> (i32, i32) {
    %c0_i32 = arith.constant 0 : i32
    %c0_i32_0 = arith.constant 0 : i32
    %c0_i32_1 = arith.constant 0 : i32
    return %c0_i32, %c0_i32_0 : i32, i32
  }
  func.func @transform_2(%arg0: i32) -> (i32, i32) {
    %c0_i32 = arith.constant 0 : i32
    %c0_i32_0 = arith.constant 0 : i32
    %c0_i32_1 = arith.constant 0 : i32
    return %c0_i32, %c0_i32_0 : i32, i32
  }
  func.func @transform_3(%arg0: i32) -> (i32, i32) {
    %c0_i32 = arith.constant 0 : i32
    %c0_i32_0 = arith.constant 0 : i32
    %c0_i32_1 = arith.constant 0 : i32
    return %c0_i32, %c0_i32_0 : i32, i32
  }
  func.func @transform_4(%arg0: i32) -> (i32, i32) {
    %c0_i32 = arith.constant 0 : i32
    %c0_i32_0 = arith.constant 0 : i32
    %c0_i32_1 = arith.constant 0 : i32
    return %c0_i32, %c0_i32_0 : i32, i32
  }
  func.func @transform_5(%arg0: i32) -> (i32, i32) {
    %c0_i32 = arith.constant 0 : i32
    %c0_i32_0 = arith.constant 0 : i32
    %c0_i32_1 = arith.constant 0 : i32
    return %c0_i32, %c0_i32_0 : i32, i32
  }
  func.func @transform_6(%arg0: i32) -> (i32, i32) {
    %c0_i32 = arith.constant 0 : i32
    %c0_i32_0 = arith.constant 0 : i32
    %c0_i32_1 = arith.constant 0 : i32
    return %c0_i32, %c0_i32_0 : i32, i32
  }
  func.func @transform_7(%arg0: i32) -> (i32, i32) {
    %c0_i32 = arith.constant 0 : i32
    %c0_i32_0 = arith.constant 0 : i32
    %c0_i32_1 = arith.constant 0 : i32
    return %c0_i32, %c0_i32_0 : i32, i32
  }
  func.func @transform_8(%arg0: i32) -> (i32, i32) {
    %c0_i32 = arith.constant 0 : i32
    %c0_i32_0 = arith.constant 0 : i32
    %c0_i32_1 = arith.constant 0 : i32
    return %c0_i32, %c0_i32_0 : i32, i32
  }
  func.func @transform_9(%arg0: i32) -> (i32, i32) {
    %c0_i32 = arith.constant 0 : i32
    %c0_i32_0 = arith.constant 0 : i32
    return %arg0, %c0_i32 : i32, i32
  }
}

</mosaic_0001>

<bundles_post_ra>
// kernel: tpu_custom_call.1
= control target key start
LH: loop header
LB: loop body
LE: loop exit
PB: predicated region body
PF: predicated region fallthrough
CT: control target
= control target key end

     0   :  { %14 = vsyncpa [#allocation3], 0  ;;  %s664_s0 = inlined_call_operand.hbm [shape: f32[8,8], index: 0, kind: input, shape index: {}]   ;;  %s665_s1 = inlined_call_operand.vmem [shape: bf16[8,128], index: 1, kind: input, shape index: {}]   ;;  %s666_s2 = inlined_call_operand.vmem [shape: f32[1,128], index: 2, kind: input, shape index: {}]   ;;  %s667_s3 = inlined_call_operand.vmem [shape: bf16[128,64], index: 3, kind: input, shape index: {}]   ;;  %s668_s4 = inlined_call_operand.vmem [shape: f32[1,64], index: 4, kind: input, shape index: {}]   ;;  %s669_s5 = inlined_call_operand.vmem [shape: bf16[64,128], index: 5, kind: input, shape index: {}]   ;;  %s670_s6 = inlined_call_operand.hbm [shape: f32[1,128], index: 6, kind: input, shape index: {}]   ;;  %s671_s7 = inlined_call_operand.vmem [shape: bf16[128,128], index: 7, kind: input, shape index: {}]   ;;  %s672_s8 = inlined_call_operand.vmem [shape: f32[1,128], index: 8, kind: input, shape index: {}]   ;;  %s673_s9 = inlined_call_operand.hbm [shape: f32[8,128], index: 9, kind: output, shape index: {}]  }
   0x1   :  { %15 = vsyncpa [#allocation6], 0 }
   0x2   :  { %16 = vsyncpa [#allocation4], 0  ;;  %s22_s11 = sshll.u32 %s664_s0, 4  ;;  %s530_s12 = smov [#allocation2]   ;;  %s23_s11 = int_to_ptr.hbm [resolvable:$true] %s22_s11 }
   0x3   :  { %s24_s13 = sshll.u32 %s530_s12, 4  ;;  %s43_s16 = sshll.u32 %s670_s6, 4  ;;  %s25_s13 = int_to_ptr.vmem [resolvable:$true] %s24_s13  ;;  %s44_s16 = int_to_ptr.hbm [resolvable:$true] %s43_s16 }
   0x4   :  { %27 = dma.hbm_to_vmem [thread:$0]  %s23_s11, 128, %s25_s13, [#allocation3]  }
   0x5   :  { %s531_s17 = smov [#allocation5]  }
   0x6   :  { %s45_s18 = sshll.u32 %s531_s17, 4  ;;  %s46_s18 = int_to_ptr.vmem [resolvable:$true] %s45_s18 }
   0x7   :  { %48 = dma.hbm_to_vmem [thread:$0]  %s44_s16, 16, %s46_s18, [#allocation6]  }
   0x8   :  { %524 = dma.done.wait [#allocation3], 128  }
   0x9   :  { %525 = vsyncadd [#allocation3], 4294967168 }
   0xa   :  { %526 = dma.done.wait [#allocation6], 16  }
   0xb   :  { %527 = vsyncadd [#allocation6], 4294967280  ;;  %vm73_vm0 = vcmask 1043456   ;;  %v64_v0 = vld [vmem:[%s665_s1] sm:$0xf]  ;;  %v428_v2 = vld [vmem:[%s667_s3 + $0x38] sm:$0xff] }
   0xc   :  { %v62_v1 = vld [vmem:[#allocation2] sm:$0xff]  ;;  %v75_v3 = vsel %vm73_vm0, %v64_v0, 0  ;;  %vm69_vm1 = vcmask 64512   ;;  %160 = vmatpush.bf16.msra.mxu1 %v428_v2  ;;  %v427_v5 = vld [vmem:[%s667_s3 + $0x30] sm:$0xff]  ;;  %v426_v6 = vld [vmem:[%s667_s3 + $0x28] sm:$0xff]  ;;  %vm211_vm2 = vcmask 523264  }
   0xd   :  { %v63_v4 = vpack.c.bf16 %v62_v1, %v62_v1  ;;  %84 = vmatpush.bf16.msra.mxu0 %v75_v3  ;;  %v425_v7 = vld [vmem:[%s667_s3 + $0x20] sm:$0xff]  ;;  %v424_v8 = vld [vmem:[%s667_s3 + $0x18] sm:$0xff]  ;;  %v423_v9 = vld [vmem:[%s667_s3 + $0x10] sm:$0xff]  ;;  %s328_s18 = sshll.u32 %s673_s9, 4  ;;  %s329_s18 = int_to_ptr.hbm [resolvable:$true] %s328_s18 }
   0xe   :  { %v422_v10 = vld [vmem:[%s667_s3 + $0x8] sm:$0xff]  ;;  %v421_v11 = vld [vmem:[%s667_s3] sm:$0xff]  ;;  %v432_v12 = vld [vmem:[%s669_s5 + $0x18] sm:$0xff] }
   0xf   :  { %219 = vmatpush.bf16.msra.mxu2 %v432_v12  ;;  %v431_v13 = vld [vmem:[%s669_s5 + $0x10] sm:$0xff]  ;;  %v444_v14 = vld [vmem:[%s666_s2] ss:$0 sm:$0xff]  ;;  %v430_v20 = vld [vmem:[%s669_s5 + $0x8] sm:$0xff] }
  0x10   :  { %339 = vmatmul.msk.bf16.vlgmr.msra.gmra.mxu0 %vm69_vm1, %v63_v4  ;;  %161 = vmatpush.bf16.msra.mxu1 %v427_v5  ;;  %v429_v21 = vld [vmem:[%s669_s5] sm:$0xff]  ;;  %v440_v22 = vld [vmem:[%s671_s7 + $0x38] sm:$0xff]  ;;  %v439_v23 = vld [vmem:[%s671_s7 + $0x30] sm:$0xff] }
  0x11   :  { %298 = vmatpush.bf16.msra.mxu3 %v440_v22  ;;  %v438_v24 = vld [vmem:[%s671_s7 + $0x28] sm:$0xff]  ;;  %v437_v25 = vld [vmem:[%s671_s7 + $0x20] sm:$0xff]  ;;  %v436_v26 = vld [vmem:[%s671_s7 + $0x18] sm:$0xff] }
  0x12   :  { %v435_v27 = vld [vmem:[%s671_s7 + $0x10] sm:$0xff]  ;;  %v445_v28 = vld [vmem:[%s668_s4] ss:$0 sm:$0xff]  ;;  %v434_v34 = vld [vmem:[%s671_s7 + $0x8] sm:$0xff] }
  0x13   :  { %220 = vmatpush.bf16.msra.mxu2 %v431_v13  ;;  %v433_v35 = vld [vmem:[%s671_s7] sm:$0xff]  ;;  %v446_v36 = vld [vmem:[#allocation5] ss:$0 sm:$0xff]  ;;  %s532_s7 = smov [#allocation7]  }
  0x14   :  { %162 = vmatpush.bf16.msra.mxu1 %v426_v6  ;;  %v447_v42 = vld [vmem:[%s672_s8] ss:$0 sm:$0xff]  ;;  %s326_s15 = sshll.u32 %s532_s7, 4  ;;  %s327_s15 = int_to_ptr.vmem [resolvable:$true] %s326_s15 }
  0x15   :  { %299 = vmatpush.bf16.msra.mxu3 %v439_v23 }
  0x17   :  { %221 = vmatpush.bf16.msra.mxu2 %v430_v20 }
  0x18   :  { %163 = vmatpush.bf16.msra.mxu1 %v425_v7 }
  0x19   :  { %300 = vmatpush.bf16.msra.mxu3 %v438_v24 }
  0x1b   :  { %222 = vmatpush.bf16.msra.mxu2 %v429_v21 }
  0x1c   :  { %164 = vmatpush.bf16.msra.mxu1 %v424_v8 }
  0x1d   :  { %301 = vmatpush.bf16.msra.mxu3 %v437_v25 }
  0x20   :  { %165 = vmatpush.bf16.msra.mxu1 %v423_v9 }
  0x21   :  { %302 = vmatpush.bf16.msra.mxu3 %v436_v26 }
  0x24   :  { %166 = vmatpush.bf16.msra.mxu1 %v422_v10 }
  0x25   :  { %303 = vmatpush.bf16.msra.mxu3 %v435_v27 }
  0x28   :  { %167 = vmatpush.bf16.msra.mxu1 %v421_v11 }
  0x29   :  { %304 = vmatpush.bf16.msra.mxu3 %v434_v34 }
  0x2d   :  { %305 = vmatpush.bf16.msra.mxu3 %v433_v35 }
  0x8d   :  { %v86_v15 = vpop.f32.mrf.mxu0 }
  0x8e   :  { %v87_v16 = vadd.f32 %v444_v14, %v86_v15 }
  0x90   :  { %v90_v17 = vmax.f32 %v87_v16, 0.0 }
  0x92   :  { %v91_v18 = vpack.c.bf16 %v90_v17, %v90_v17 }
  0x94   :  { %168 = vmatmul.bf16.vlgmr.msra.gmra.mxu1 %v91_v18 }
  0x95   :  { %v88_v19 = vpop.f32.mrf.mxu0 }
 0x111   :  { %v169_v29 = vpop.f32.mrf.mxu1 }
 0x112   :  { %v170_v30 = vadd.f32 %v445_v28, %v169_v29 }
 0x114   :  { %v173_v31 = vmax.f32 %v170_v30, 0.0 }
 0x116   :  { %v174_v32 = vpack.c.bf16 %v173_v31, %v173_v31 }
 0x118   :  { %388 = vmatmul.msk.bf16.vlgmr.msra.gmra.mxu2 %vm211_vm2, %v174_v32 }
 0x119   :  { %v171_v33 = vpop.f32.mrf.mxu1 }
 0x19b   :  { %v224_v37 = vpop.f32.mrf.mxu2 }
 0x19c   :  { %v225_v38 = vadd.f32 %v446_v36, %v224_v37 }
 0x19e   :  { %v228_v39 = vmax.f32 %v225_v38, 0.0 }
 0x1a0   :  { %v229_v40 = vpack.c.bf16 %v228_v39, %v228_v39 }
 0x1a2   :  { %306 = vmatmul.bf16.vlgmr.msra.gmra.mxu3 %v229_v40 }
 0x1a3   :  { %v226_v41 = vpop.f32.mrf.mxu2 }
 0x225   :  { %v307_v43 = vpop.f32.mrf.mxu3 }
 0x226   :  { %v308_v44 = vadd.f32 %v447_v42, %v307_v43 }
 0x228   :  { %311 = vmax.xlane.f32.xlu0 %v308_v44 }
 0x22d   :  { %v309_v45 = vpop.f32.mrf.mxu3 }
 0x29b   :  { %v312_v46 = vpop.xlane.xlu0 %311 }
 0x29c   :  { %v313_v47 = vsub.f32 %v308_v44, %v312_v46 }
 0x29e   :  { %v314_v48 = vmul.f32 1.442695, %v313_v47 }
 0x2a0   :  { %448 = vpow2.f32 %v314_v48 }
 0x2a6   :  { %v449_v49 = vpop.eup %448 }
 0x2a7   :  { %316 = vadd.xlane.f32.xlu0 %v449_v49 }
 0x31a   :  { %v317_v50 = vpop.xlane.xlu0 %316 }
 0x31b   :  { %450 = vrcp.f32 %v317_v50 }
 0x321   :  { %v451_v51 = vpop.eup %450 }
 0x322   :  { %v319_v52 = vmul.f32 %v451_v51, %v449_v49 }
 0x324   :  { %320 = vst [vmem:[#allocation7] sm:$0xff] %v319_v52 }
 0x325   :  { %331 = dma.vmem_to_hbm [thread:$0]  %s327_s15, 128, %s329_s18, [#allocation4]  }
 0x326   :  { %528 = dma.done.wait [#allocation4], 128  }
 0x327   :  { %529 = vsyncadd [#allocation4], 4294967168 }
 0x328   :  { %336 = vsyncpa [#allocation3], 1 }
 0x329   :  { %337 = vsyncpa [#allocation6], 1 }
 0x32a   :  { %338 = vsyncpa [#allocation4], 1 }

</bundles_post_ra>
